<compile_context>
chip_gen: v7x
topology: tpu7x:2x2x1
jax: 0.10.0
libtpu: 0.0.40
codegen_flags: <defaults>
</compile_context>

<pallas_src>
import functools

import jax
import jax.numpy as jnp
from jax.experimental import pallas as pl
from jax.experimental.pallas import tpu as pltpu


# ---------------------------------------------------------------------------
# Kernel
# ---------------------------------------------------------------------------
def _mlp_kernel(n_linear, out_pads, compute_dtype, x_ref, *refs):
    """Whole-MLP forward for one batch tile.

    refs = (w0, w1, ..., w_{L-1}, packed_bias, out_ref)
    ReLU after every linear layer except the last one (matches
    nn.Sequential([Linear, ReLU] * (hidden_layers+1) + [Linear])).
    """
    out_ref = refs[-1]
    bias_ref = refs[-2]
    w_refs = refs[:-2]

    # Packed biases: (n_linear, max_out_pad) f32, loaded once per tile.
    b_all = bias_ref[...].astype(jnp.float32)

    h = x_ref[...].astype(jnp.float32)
    for li in range(n_linear):
        w = w_refs[li][...]                                   # (in_pad, out_pad)
        acc = jnp.dot(h.astype(compute_dtype), w,
                      preferred_element_type=jnp.float32)     # f32 accumulation
        acc = acc + b_all[li:li + 1, :out_pads[li]]           # (1, out_pad) bcast
        if li < n_linear - 1:
            h = jnp.maximum(acc, 0.0)
        else:
            h = acc
    out_ref[...] = h.astype(out_ref.dtype)


# ---------------------------------------------------------------------------
# Wrapper
# ---------------------------------------------------------------------------
def _round_up(n, m):
    return ((n + m - 1) // m) * m


def _choose_batch_tile(B, requested):
    """Pick a batch tile: big enough to fill the MXU, split so the grid has
    >=2 steps when the batch allows (v7x has 2 TensorCores)."""
    B8 = _round_up(max(B, 8), 8)
    tile = _round_up(min(requested, B8), 8)
    if B8 // tile < 2 and B8 >= 16:
        tile = _round_up((B8 + 1) // 2, 8)
    return tile


def policy_cloning_forward(x, weights, biases, *, batch_tile=256,
                           compute_dtype=jnp.bfloat16):
    """Run the MLP forward pass with a single Pallas kernel.

    x:       (B, n_state_dims) float32
    weights: list of (out_i, in_i) float32 arrays (PyTorch nn.Linear layout)
    biases:  list of (out_i,) float32 arrays
    returns: (B, n_control_dims) float32
    """
    B, n_state = x.shape
    n_control = weights[-1].shape[0]
    n_linear = len(weights)

    LANE = 128
    tile = _choose_batch_tile(B, batch_tile)
    B_pad = _round_up(max(B, tile), tile)

    def pad_to(a, shape):
        pads = [(0, s - d) for d, s in zip(a.shape, shape)]
        return jnp.pad(a, pads)

    in_dims = [w.shape[1] for w in weights]
    out_dims = [w.shape[0] for w in weights]
    in_pads = [_round_up(d, LANE) for d in in_dims]
    out_pads = [_round_up(d, LANE) for d in out_dims]
    assert in_dims[0] == n_state

    # Inputs / weights go to the MXU in compute_dtype (bf16 by default);
    # biases stay f32 (added to the f32 accumulator).
    x_p = pad_to(x.astype(compute_dtype), (B_pad, in_pads[0]))

    w_params = []
    for li in range(n_linear):
        w_io = jnp.transpose(weights[li]).astype(compute_dtype)   # (in, out)
        w_params.append(pad_to(w_io, (in_pads[li], out_pads[li])))

    max_out_pad = max(out_pads)
    bias_pack = jnp.zeros((n_linear, max_out_pad), jnp.float32)
    for li in range(n_linear):
        bias_pack = bias_pack.at[li, :out_dims[li]].set(
            biases[li].astype(jnp.float32))

    C_pad = out_pads[-1]
    grid = (B_pad // tile,)

    in_specs = [pl.BlockSpec((tile, in_pads[0]), lambda i: (i, 0))]
    for li in range(n_linear):
        in_specs.append(
            pl.BlockSpec((in_pads[li], out_pads[li]), lambda i: (0, 0)))
    in_specs.append(
        pl.BlockSpec((n_linear, max_out_pad), lambda i: (0, 0)))

    out_spec = pl.BlockSpec((tile, C_pad), lambda i: (i, 0))

    kernel = functools.partial(_mlp_kernel, n_linear, tuple(out_pads),
                               compute_dtype)

    out_padded = pl.pallas_call(
        kernel,
        out_shape=jax.ShapeDtypeStruct((B_pad, C_pad), jnp.float32),
        grid_spec=pltpu.PrefetchScalarGridSpec(
            num_scalar_prefetch=0,
            grid=grid,
            in_specs=in_specs,
            out_specs=out_spec,
        ),
        compiler_params=pltpu.CompilerParams(
            dimension_semantics=("parallel",)),
    )(x_p, *w_params, bias_pack)

    return out_padded[:B, :n_control]


# ---------------------------------------------------------------------------
# Deterministic parameter construction (mirrors PolicyCloningModel.__init__)
# ---------------------------------------------------------------------------
def build_params(key, hidden_layers, hidden_layer_width, n_state_dims,
                 n_control_dims):
    """Deterministic init; nn.Linear-style uniform(-1/sqrt(fan_in), ...)."""
    dims = ([n_state_dims] + [hidden_layer_width] * (hidden_layers + 1)
            + [n_control_dims])
    weights, biases = [], []
    for i in range(len(dims) - 1):
        fan_in, fan_out = dims[i], dims[i + 1]
        key, kw, kb = jax.random.split(key, 3)
        bound = 1.0 / jnp.sqrt(jnp.float32(fan_in))
        w = jax.random.uniform(kw, (fan_out, fan_in), jnp.float32,
                               -bound, bound)          # PyTorch (out, in)
        b = jax.random.uniform(kb, (fan_out,), jnp.float32, -bound, bound)
        weights.append(w)
        biases.append(b)
    return weights, biases


def reference_forward(x, weights, biases):
    h = x
    n_linear = len(weights)
    for li in range(n_linear):
        h = h @ weights[li].T + biases[li]
        if li < n_linear - 1:
            h = jnp.maximum(h, 0.0)
    return h


if __name__ == "__main__":
    # Shapes consistent with the module.
    hidden_layers = 2
    hidden_layer_width = 32
    n_state_dims = 4
    n_control_dims = 2

    key = jax.random.PRNGKey(0)
    key, kx = jax.random.split(key)
    weights, biases = build_params(key, hidden_layers, hidden_layer_width,
                                   n_state_dims, n_control_dims)

    # 1) Small batch, exact f32 path (single grid step).
    x_small = jax.random.normal(kx, (8, n_state_dims), jnp.float32)
    out_f32 = policy_cloning_forward(x_small, weights, biases,
                                     compute_dtype=jnp.float32)
    out_f32 = jax.block_until_ready(out_f32)
    ref_small = reference_forward(x_small, weights, biases)
    assert out_f32.shape == (8, n_control_dims)
    assert jnp.allclose(out_f32, ref_small, atol=1e-5, rtol=1e-5), (
        f"f32 max err {jnp.max(jnp.abs(out_f32 - ref_small))}")

    # 2) Larger batch, default bf16 MXU path; exercises a multi-step grid
    #    (megacore-splittable on v7x) and remainder padding.
    key, kx2 = jax.random.split(key)
    x_big = jax.random.normal(kx2, (300, n_state_dims), jnp.float32)
    out_bf16 = policy_cloning_forward(x_big, weights, biases)
    out_bf16 = jax.block_until_ready(out_bf16)
    ref_big = reference_forward(x_big, weights, biases)
    assert out_bf16.shape == (300, n_control_dims)
    max_err = jnp.max(jnp.abs(out_bf16 - ref_big))
    assert max_err < 5e-2, f"bf16 max err {max_err}"

    print("KERNEL_OK")
</pallas_src>

<mosaic_0001>
module attributes {stable_mosaic.version = 11 : i64} {
  func.func @_mlp_kernel(%arg0: i32, %arg1: memref<8x128xf32, #tpu.memory_space<vmem>>, %arg2: memref<128x128xf32, #tpu.memory_space<vmem>>, %arg3: memref<128x128xf32, #tpu.memory_space<vmem>>, %arg4: memref<128x128xf32, #tpu.memory_space<vmem>>, %arg5: memref<128x128xf32, #tpu.memory_space<vmem>>, %arg6: memref<4x128xf32, #tpu.memory_space<vmem>>, %arg7: memref<8x128xf32, #tpu.memory_space<vmem>>) attributes {dimension_semantics = [#tpu.dimension_semantics<parallel>], iteration_bounds = array<i64: 1>, scalar_prefetch = 0 : i64, scratch_operands = 0 : i64, tpu.core_type = #tpu.core_type<tc>, window_params = [{transform_indices = @transform_0, window_bounds = array<i64: 8, 128>}, {pipeline_mode = #tpu.pipeline_mode<synchronous>, transform_indices = @transform_1, window_bounds = array<i64: 128, 128>}, {pipeline_mode = #tpu.pipeline_mode<synchronous>, transform_indices = @transform_2, window_bounds = array<i64: 128, 128>}, {pipeline_mode = #tpu.pipeline_mode<synchronous>, transform_indices = @transform_3, window_bounds = array<i64: 128, 128>}, {pipeline_mode = #tpu.pipeline_mode<synchronous>, transform_indices = @transform_4, window_bounds = array<i64: 128, 128>}, {pipeline_mode = #tpu.pipeline_mode<synchronous>, transform_indices = @transform_5, window_bounds = array<i64: 4, 128>}, {transform_indices = @transform_6, window_bounds = array<i64: 8, 128>}]} {
    %c0 = arith.constant 0 : index
    %c0_0 = arith.constant 0 : index
    %0 = vector.load %arg6[%c0, %c0_0] : memref<4x128xf32, #tpu.memory_space<vmem>>, vector<4x128xf32>
    %c0_1 = arith.constant 0 : index
    %c0_2 = arith.constant 0 : index
    %1 = vector.load %arg1[%c0_1, %c0_2] : memref<8x128xf32, #tpu.memory_space<vmem>>, vector<8x128xf32>
    %c0_3 = arith.constant 0 : index
    %c0_4 = arith.constant 0 : index
    %2 = vector.load %arg2[%c0_3, %c0_4] : memref<128x128xf32, #tpu.memory_space<vmem>>, vector<128x128xf32>
    %cst = arith.constant dense<0.000000e+00> : vector<8x128xf32>
    %3 = tpu.matmul %1, %2, %cst {dimension_numbers = #tpu.dot_dimension_numbers<[1], [0], [0], [1], [0, 0, 1, 1], [], []>} : vector<8x128xf32>, vector<128x128xf32>, vector<8x128xf32> -> vector<8x128xf32>
    %4 = vector.extract_strided_slice %0 {offsets = [0, 0], sizes = [1, 128], strides = [1, 1]} : vector<4x128xf32> to vector<1x128xf32>
    %5 = vector.broadcast %4 : vector<1x128xf32> to vector<8x128xf32>
    %6 = arith.addf %3, %5 : vector<8x128xf32>
    %cst_5 = arith.constant 0.000000e+00 : f32
    %7 = vector.broadcast %cst_5 : f32 to vector<8x128xf32>
    %8 = arith.maximumf %6, %7 : vector<8x128xf32>
    %c0_6 = arith.constant 0 : index
    %c0_7 = arith.constant 0 : index
    %9 = vector.load %arg3[%c0_6, %c0_7] : memref<128x128xf32, #tpu.memory_space<vmem>>, vector<128x128xf32>
    %cst_8 = arith.constant dense<0.000000e+00> : vector<8x128xf32>
    %10 = tpu.matmul %8, %9, %cst_8 {dimension_numbers = #tpu.dot_dimension_numbers<[1], [0], [0], [1], [0, 0, 1, 1], [], []>} : vector<8x128xf32>, vector<128x128xf32>, vector<8x128xf32> -> vector<8x128xf32>
    %11 = vector.extract_strided_slice %0 {offsets = [1, 0], sizes = [1, 128], strides = [1, 1]} : vector<4x128xf32> to vector<1x128xf32>
    %12 = vector.broadcast %11 : vector<1x128xf32> to vector<8x128xf32>
    %13 = arith.addf %10, %12 : vector<8x128xf32>
    %cst_9 = arith.constant 0.000000e+00 : f32
    %14 = vector.broadcast %cst_9 : f32 to vector<8x128xf32>
    %15 = arith.maximumf %13, %14 : vector<8x128xf32>
    %c0_10 = arith.constant 0 : index
    %c0_11 = arith.constant 0 : index
    %16 = vector.load %arg4[%c0_10, %c0_11] : memref<128x128xf32, #tpu.memory_space<vmem>>, vector<128x128xf32>
    %cst_12 = arith.constant dense<0.000000e+00> : vector<8x128xf32>
    %17 = tpu.matmul %15, %16, %cst_12 {dimension_numbers = #tpu.dot_dimension_numbers<[1], [0], [0], [1], [0, 0, 1, 1], [], []>} : vector<8x128xf32>, vector<128x128xf32>, vector<8x128xf32> -> vector<8x128xf32>
    %18 = vector.extract_strided_slice %0 {offsets = [2, 0], sizes = [1, 128], strides = [1, 1]} : vector<4x128xf32> to vector<1x128xf32>
    %19 = vector.broadcast %18 : vector<1x128xf32> to vector<8x128xf32>
    %20 = arith.addf %17, %19 : vector<8x128xf32>
    %cst_13 = arith.constant 0.000000e+00 : f32
    %21 = vector.broadcast %cst_13 : f32 to vector<8x128xf32>
    %22 = arith.maximumf %20, %21 : vector<8x128xf32>
    %c0_14 = arith.constant 0 : index
    %c0_15 = arith.constant 0 : index
    %23 = vector.load %arg5[%c0_14, %c0_15] : memref<128x128xf32, #tpu.memory_space<vmem>>, vector<128x128xf32>
    %cst_16 = arith.constant dense<0.000000e+00> : vector<8x128xf32>
    %24 = tpu.matmul %22, %23, %cst_16 {dimension_numbers = #tpu.dot_dimension_numbers<[1], [0], [0], [1], [0, 0, 1, 1], [], []>} : vector<8x128xf32>, vector<128x128xf32>, vector<8x128xf32> -> vector<8x128xf32>
    %25 = vector.extract_strided_slice %0 {offsets = [3, 0], sizes = [1, 128], strides = [1, 1]} : vector<4x128xf32> to vector<1x128xf32>
    %26 = vector.broadcast %25 : vector<1x128xf32> to vector<8x128xf32>
    %27 = arith.addf %24, %26 : vector<8x128xf32>
    %c0_17 = arith.constant 0 : index
    %c0_18 = arith.constant 0 : index
    %28 = vector.load %arg7[%c0_17, %c0_18] : memref<8x128xf32, #tpu.memory_space<vmem>>, vector<8x128xf32>
    tpu.vector_store %arg7[%c0_17, %c0_18], %27 {strides = array<i32>} : memref<8x128xf32, #tpu.memory_space<vmem>>, vector<8x128xf32>,
    return
  }
  func.func @transform_0(%arg0: i32) -> (i32, i32) {
    %c0_i32 = arith.constant 0 : i32
    %c0_i32_0 = arith.constant 0 : i32
    return %arg0, %c0_i32 : i32, i32
  }
  func.func @transform_1(%arg0: i32) -> (i32, i32) {
    %c0_i32 = arith.constant 0 : i32
    %c0_i32_0 = arith.constant 0 : i32
    %c0_i32_1 = arith.constant 0 : i32
    return %c0_i32, %c0_i32_0 : i32, i32
  }
  func.func @transform_2(%arg0: i32) -> (i32, i32) {
    %c0_i32 = arith.constant 0 : i32
    %c0_i32_0 = arith.constant 0 : i32
    %c0_i32_1 = arith.constant 0 : i32
    return %c0_i32, %c0_i32_0 : i32, i32
  }
  func.func @transform_3(%arg0: i32) -> (i32, i32) {
    %c0_i32 = arith.constant 0 : i32
    %c0_i32_0 = arith.constant 0 : i32
    %c0_i32_1 = arith.constant 0 : i32
    return %c0_i32, %c0_i32_0 : i32, i32
  }
  func.func @transform_4(%arg0: i32) -> (i32, i32) {
    %c0_i32 = arith.constant 0 : i32
    %c0_i32_0 = arith.constant 0 : i32
    %c0_i32_1 = arith.constant 0 : i32
    return %c0_i32, %c0_i32_0 : i32, i32
  }
  func.func @transform_5(%arg0: i32) -> (i32, i32) {
    %c0_i32 = arith.constant 0 : i32
    %c0_i32_0 = arith.constant 0 : i32
    %c0_i32_1 = arith.constant 0 : i32
    return %c0_i32, %c0_i32_0 : i32, i32
  }
  func.func @transform_6(%arg0: i32) -> (i32, i32) {
    %c0_i32 = arith.constant 0 : i32
    %c0_i32_0 = arith.constant 0 : i32
    return %arg0, %c0_i32 : i32, i32
  }
}

</mosaic_0001>

<bundles_post_ra>
// kernel: tpu_custom_call.1
= control target key start
LH: loop header
LB: loop body
LE: loop exit
PB: predicated region body
PF: predicated region fallthrough
CT: control target
= control target key end

     0   :  { %11 = vsyncpa [#allocation3], 0  ;;  %s1113_s0 = inlined_call_operand.hbm [shape: f32[8,128], index: 0, kind: input, shape index: {}]   ;;  %s1114_s1 = inlined_call_operand.hbm [shape: f32[128,128], index: 1, kind: input, shape index: {}]   ;;  %s1115_s2 = inlined_call_operand.hbm [shape: f32[128,128], index: 2, kind: input, shape index: {}]   ;;  %s1116_s3 = inlined_call_operand.hbm [shape: f32[128,128], index: 3, kind: input, shape index: {}]   ;;  %s1117_s4 = inlined_call_operand.hbm [shape: f32[128,128], index: 4, kind: input, shape index: {}]   ;;  %s1118_s5 = inlined_call_operand.vmem [shape: f32[4,128], index: 5, kind: input, shape index: {}]   ;;  %s1119_s6 = inlined_call_operand.hbm [shape: f32[8,128], index: 6, kind: output, shape index: {}]  }
   0x1   :  { %12 = vsyncpa [#allocation6], 0 }
   0x2   :  { %13 = vsyncpa [#allocation9], 0 }
   0x3   :  { %14 = vsyncpa [#allocation4], 0  ;;  %s928_s21 = smov [#allocation5]   ;;  %s788_s25 = scalar_lea.hbm %s1114_s1, 2048 }
   0x4   :  { %s30_s22 = sshll.u32 %s928_s21, 4  ;;  %p789_p0 = scmp.ne.s32.totalorder %s1114_s1, %s788_s25  ;;  %s31_s22 = int_to_ptr.vmem [resolvable:$true] %s30_s22 }
   0x5   :  { %p792_p1 = scmp.lt.u32.totalorder %s788_s25, %s1114_s1 }
   0x7   :  { %p794_p2 = pnand %p792_p1, %p789_p0 }
   0x9   :  { %797 = shalt.err (!%p794_p2)
}
   0xa   :  { %s798_s30 = scalar_lea.vmem %s31_s22, 2048  ;;  %p803_p4 = scmp.lt.s32.totalorder %s31_s22, %s31_s22 }
   0xb   :  { %p799_p3 = scmp.ne.s32.totalorder %s31_s22, %s798_s30  ;;  %p804_p5 = scmp.lt.s32.totalorder %s798_s30, %s798_s30 }
   0xd   :  { %p805_p6 = por %p804_p5, %p803_p4 }
   0xf   :  { %p806_p7 = pnand %p805_p6, %p799_p3 }
  0x11   :  { %809 = shalt.err (!%p806_p7)
}
  0x12   :  { %s929_s7 = smov 128   ;;  %s930_s8 = smov 8  }
  0x13   :  { %36 = dma.hbm_to_vmem [thread:$0]  %s1114_s1, 2048, %s31_s22, [#allocation6], %s929_s7, %s929_s7, %s930_s8  }
  0x14   :  { %s931_s11 = smov [#allocation8]   ;;  %s932_s13 = smov [#allocation2]  }
  0x15   :  { %s54_s12 = sshll.u32 %s931_s11, 4  ;;  %s21_s14 = sshll.u32 %s932_s13, 4  ;;  %s55_s12 = int_to_ptr.vmem [resolvable:$true] %s54_s12  ;;  %s22_s14 = int_to_ptr.vmem [resolvable:$true] %s21_s14 }
  0x16   :  { %s810_s17 = scalar_lea.hbm %s1116_s3, 2048 }
  0x17   :  { %p811_p8 = scmp.ne.s32.totalorder %s1116_s3, %s810_s17  ;;  %p814_p9 = scmp.lt.u32.totalorder %s810_s17, %s1116_s3 }
  0x19   :  { %p816_p10 = pnand %p814_p9, %p811_p8 }
  0x1b   :  { %819 = shalt.err (!%p816_p10)
}
  0x1c   :  { %s820_s1 = scalar_lea.vmem %s55_s12, 2048  ;;  %p825_p12 = scmp.lt.s32.totalorder %s55_s12, %s55_s12 }
  0x1d   :  { %p821_p11 = scmp.ne.s32.totalorder %s55_s12, %s820_s1  ;;  %p826_p13 = scmp.lt.s32.totalorder %s820_s1, %s820_s1 }
  0x1f   :  { %p827_p0 = por %p826_p13, %p825_p12 }
  0x21   :  { %p828_p1 = pnand %p827_p0, %p821_p11 }
  0x23   :  { %831 = shalt.err (!%p828_p1)
}
  0x24   :  { %60 = dma.hbm_to_vmem [thread:$0]  %s1116_s3, 2048, %s55_s12, [#allocation9], %s929_s7, %s929_s7, %s930_s8  }
  0x25   :  { %s832_s26 = scalar_lea.hbm %s1113_s0, 128 }
  0x26   :  { %p833_p2 = scmp.ne.s32.totalorder %s1113_s0, %s832_s26  ;;  %p836_p3 = scmp.lt.u32.totalorder %s832_s26, %s1113_s0 }
  0x28   :  { %p838_p4 = pnand %p836_p3, %p833_p2 }
  0x2a   :  { %841 = shalt.err (!%p838_p4)
}
  0x2b   :  { %s842_s9 = scalar_lea.vmem %s22_s14, 128  ;;  %p847_p6 = scmp.lt.s32.totalorder %s22_s14, %s22_s14 }
  0x2c   :  { %p843_p5 = scmp.ne.s32.totalorder %s22_s14, %s842_s9  ;;  %p848_p7 = scmp.lt.s32.totalorder %s842_s9, %s842_s9 }
  0x2e   :  { %p849_p8 = por %p848_p7, %p847_p6 }
  0x30   :  { %p850_p9 = pnand %p849_p8, %p843_p5 }
  0x32   :  { %853 = shalt.err (!%p850_p9)
}
  0x33   :  { %24 = dma.hbm_to_vmem [thread:$0]  %s1113_s0, 128, %s22_s14, [#allocation3]  }
  0x34   :  { %s933_s11 = smov [#allocation7]   ;;  %s934_s13 = smov [#allocation10]  }
  0x35   :  { %s42_s12 = sshll.u32 %s933_s11, 4  ;;  %s66_s15 = sshll.u32 %s934_s13, 4  ;;  %s43_s12 = int_to_ptr.vmem [resolvable:$true] %s42_s12  ;;  %s67_s15 = int_to_ptr.vmem [resolvable:$true] %s66_s15 }
  0x36   :  { %s854_s18 = scalar_lea.hbm %s1115_s2, 2048 }
  0x37   :  { %p855_p10 = scmp.ne.s32.totalorder %s1115_s2, %s854_s18  ;;  %p858_p11 = scmp.lt.u32.totalorder %s854_s18, %s1115_s2 }
  0x39   :  { %p860_p12 = pnand %p858_p11, %p855_p10 }
  0x3b   :  { %863 = shalt.err (!%p860_p12)
}
  0x3c   :  { %s864_s0 = scalar_lea.vmem %s43_s12, 2048  ;;  %p869_p0 = scmp.lt.s32.totalorder %s43_s12, %s43_s12 }
  0x3d   :  { %p865_p13 = scmp.ne.s32.totalorder %s43_s12, %s864_s0  ;;  %p870_p1 = scmp.lt.s32.totalorder %s864_s0, %s864_s0 }
  0x3f   :  { %p871_p2 = por %p870_p1, %p869_p0 }
  0x41   :  { %p872_p3 = pnand %p871_p2, %p865_p13 }
  0x43   :  { %875 = shalt.err (!%p872_p3)
}
  0x44   :  { %48 = dma.hbm_to_vmem [thread:$0]  %s1115_s2, 2048, %s43_s12, [#allocation6], %s929_s7, %s929_s7, %s930_s8  }
  0x45   :  { %s876_s25 = scalar_lea.hbm %s1117_s4, 2048 }
  0x46   :  { %p877_p4 = scmp.ne.s32.totalorder %s1117_s4, %s876_s25  ;;  %p880_p5 = scmp.lt.u32.totalorder %s876_s25, %s1117_s4 }
  0x48   :  { %p882_p6 = pnand %p880_p5, %p877_p4 }
  0x4a   :  { %885 = shalt.err (!%p882_p6)
}
  0x4b   :  { %s886_s30 = scalar_lea.vmem %s67_s15, 2048  ;;  %p891_p8 = scmp.lt.s32.totalorder %s67_s15, %s67_s15 }
  0x4c   :  { %p887_p7 = scmp.ne.s32.totalorder %s67_s15, %s886_s30  ;;  %p892_p9 = scmp.lt.s32.totalorder %s886_s30, %s886_s30 }
  0x4e   :  { %p893_p10 = por %p892_p9, %p891_p8 }
  0x50   :  { %p894_p11 = pnand %p893_p10, %p887_p7 }
  0x52   :  { %897 = shalt.err (!%p894_p11)
}
  0x53   :  { %72 = dma.hbm_to_vmem [thread:$0]  %s1117_s4, 2048, %s67_s15, [#allocation9], %s929_s7, %s929_s7, %s930_s8  }
  0x54   :  { %920 = dma.done.wait [#allocation3], 128  }
  0x55   :  { %921 = vsyncadd [#allocation3], 4294967168 }
  0x56   :  { %922 = dma.done.wait [#allocation6], 4096  }
  0x57   :  { %923 = vsyncadd [#allocation6], 4294963200 }
  0x58   :  { %924 = dma.done.wait [#allocation9], 4096  }
  0x59   :  { %925 = vsyncadd [#allocation9], 4294963200  ;;  %v935_v0 = vmov 0.0|0.0   ;;  %vm936_vm0 = vmmov 0   ;;  %v937_v1 = vmov 0.0   ;;  %v92_v2 = vld [vmem:[#allocation5] sm:$0xff] }
  0x5a   :  { %681 = vmatprep.subr.bf16.mxu0 %v935_v0  ;;  %573 = vmatprep.mubr.msk.f32.mxu0 %vm936_vm0, %v937_v1  ;;  %v93_v3 = vld [vmem:[#allocation5 + $0x8] sm:$0xff]  ;;  %v94_v4 = vld [vmem:[#allocation5 + $0x10] sm:$0xff]  ;;  %v95_v6 = vld [vmem:[#allocation5 + $0x18] sm:$0xff] }
  0x5b   :  { %705 = vmatprep.subr.bf16.mxu1 %v935_v0  ;;  %608 = vmatprep.mubr.msk.f32.mxu1 %vm936_vm0, %v937_v1  ;;  %v682_v5 = vpack.c.bf16 %v93_v3, %v92_v2  ;;  %v685_v7 = vpack.c.bf16 %v95_v6, %v94_v4  ;;  %v96_v8 = vld [vmem:[#allocation5 + $0x20] sm:$0xff]  ;;  %v97_v9 = vld [vmem:[#allocation5 + $0x28] sm:$0xff]  ;;  %v185_v12 = vld [vmem:[#allocation7 + $0x10] sm:$0xff] }
  0x5c   :  { %v183_v10 = vld [vmem:[#allocation7] sm:$0xff]  ;;  %v184_v11 = vld [vmem:[#allocation7 + $0x8] sm:$0xff]  ;;  %v186_v13 = vld [vmem:[#allocation7 + $0x18] sm:$0xff]  ;;  %v688_v14 = vpack.c.bf16 %v97_v9, %v96_v8 }
  0x5d   :  { %683 = vmatpush3.bf16.msra.mxu0 %v682_v5  ;;  %v706_v15 = vpack.c.bf16 %v184_v11, %v183_v10  ;;  %v98_v16 = vld [vmem:[#allocation5 + $0x30] sm:$0xff]  ;;  %v99_v17 = vld [vmem:[#allocation5 + $0x38] sm:$0xff]  ;;  %v709_v18 = vpack.c.bf16 %v186_v13, %v185_v12  ;;  %v187_v19 = vld [vmem:[#allocation7 + $0x20] sm:$0xff]  ;;  %v108_v10 = vlaneseq }
  0x5e   :  { %684 = vmatprep.subr.bf16.mxu0 %v935_v0  ;;  %v188_v20 = vld [vmem:[#allocation7 + $0x28] sm:$0xff]  ;;  %v691_v21 = vpack.c.bf16 %v99_v17, %v98_v16  ;;  %v100_v22 = vld [vmem:[#allocation5 + $0x40] sm:$0xff]  ;;  %v189_v25 = vld [vmem:[#allocation7 + $0x30] sm:$0xff] }
  0x5f   :  { %707 = vmatpush3.bf16.msra.mxu1 %v706_v15  ;;  %v101_v23 = vld [vmem:[#allocation5 + $0x48] sm:$0xff]  ;;  %v712_v24 = vpack.c.bf16 %v188_v20, %v187_v19  ;;  %v190_v26 = vld [vmem:[#allocation7 + $0x38] sm:$0xff]  ;;  %v102_v28 = vld [vmem:[#allocation5 + $0x50] sm:$0xff]  ;;  %v1077_v11 = vshrl.u32 %v108_v10, 7 }
  0x60   :  { %708 = vmatprep.subr.bf16.mxu1 %v935_v0  ;;  %v694_v27 = vpack.c.bf16 %v101_v23, %v100_v22  ;;  %v103_v29 = vld [vmem:[#allocation5 + $0x58] sm:$0xff]  ;;  %v715_v30 = vpack.c.bf16 %v190_v26, %v189_v25  ;;  %v191_v31 = vld [vmem:[#allocation7 + $0x40] sm:$0xff]  ;;  %v192_v32 = vld [vmem:[#allocation7 + $0x48] sm:$0xff] }
  0x61   :  { %686 = vmatpush3.bf16.msra.mxu0 %v685_v7  ;;  %v697_v33 = vpack.c.bf16 %v103_v29, %v102_v28  ;;  %v104_v34 = vld [vmem:[#allocation5 + $0x60] sm:$0xff]  ;;  %v105_v35 = vld [vmem:[#allocation5 + $0x68] sm:$0xff]  ;;  %v718_v36 = vpack.c.bf16 %v192_v32, %v191_v31  ;;  %v193_v37 = vld [vmem:[#allocation7 + $0x50] sm:$0xff]  ;;  %v110_v12 = vsub.s32 0, %v1077_v11 }
  0x62   :  { %687 = vmatprep.subr.bf16.mxu0 %v935_v0  ;;  %v194_v38 = vld [vmem:[#allocation7 + $0x58] sm:$0xff]  ;;  %v700_v39 = vpack.c.bf16 %v105_v35, %v104_v34  ;;  %v106_v40 = vld [vmem:[#allocation5 + $0x70] sm:$0xff]  ;;  %v195_v43 = vld [vmem:[#allocation7 + $0x60] sm:$0xff] }
  0x63   :  { %710 = vmatpush3.bf16.msra.mxu1 %v709_v18  ;;  %v107_v41 = vld [vmem:[#allocation5 + $0x78] sm:$0xff]  ;;  %v721_v42 = vpack.c.bf16 %v194_v38, %v193_v37  ;;  %v196_v44 = vld [vmem:[#allocation7 + $0x68] sm:$0xff]  ;;  %v197_v48 = vld [vmem:[#allocation7 + $0x70] sm:$0xff] }
  0x64   :  { %711 = vmatprep.subr.bf16.mxu1 %v935_v0  ;;  %v703_v45 = vpack.c.bf16 %v107_v41, %v106_v40  ;;  %v724_v46 = vpack.c.bf16 %v196_v44, %v195_v43  ;;  %v91_v47 = vld [vmem:[#allocation2] sm:$0xff]  ;;  %v274_v51 = vld [vmem:[#allocation8] sm:$0xff]  ;;  %v275_v52 = vld [vmem:[#allocation8 + $0x8] sm:$0xff] }
  0x65   :  { %689 = vmatpush3.bf16.msra.mxu0 %v688_v14  ;;  %v198_v49 = vld [vmem:[#allocation7 + $0x78] sm:$0xff]  ;;  %v276_v53 = vld [vmem:[#allocation8 + $0x10] sm:$0xff]  ;;  %v730_v54 = vpack.c.bf16 %v275_v52, %v274_v51  ;;  %v278_v57 = vld [vmem:[#allocation8 + $0x20] sm:$0xff]  ;;  %v292_v51 = vsub.s32 2, %v1077_v11 }
  0x66   :  { %690 = vmatprep.subr.bf16.mxu0 %v935_v0  ;;  %v727_v50 = vpack.c.bf16 %v198_v49, %v197_v48  ;;  %v277_v55 = vld [vmem:[#allocation8 + $0x18] sm:$0xff]  ;;  %v279_v58 = vld [vmem:[#allocation8 + $0x28] sm:$0xff]  ;;  %v280_v60 = vld [vmem:[#allocation8 + $0x30] sm:$0xff] }
  0x67   :  { %713 = vmatpush3.bf16.msra.mxu1 %v712_v24  ;;  %v733_v56 = vpack.c.bf16 %v277_v55, %v276_v53  ;;  %v736_v59 = vpack.c.bf16 %v279_v58, %v278_v57  ;;  %v281_v61 = vld [vmem:[#allocation8 + $0x38] sm:$0xff]  ;;  %v282_v63 = vld [vmem:[#allocation8 + $0x40] sm:$0xff]  ;;  %v283_v2 = vld [vmem:[#allocation8 + $0x48] sm:$0xff] }
  0x68   :  { %714 = vmatprep.subr.bf16.mxu1 %v935_v0  ;;  %v739_v62 = vpack.c.bf16 %v281_v61, %v280_v60  ;;  %v742_v3 = vpack.c.bf16 %v283_v2, %v282_v63  ;;  %v284_v4 = vld [vmem:[#allocation8 + $0x50] sm:$0xff]  ;;  %v285_v5 = vld [vmem:[#allocation8 + $0x58] sm:$0xff]  ;;  %v286_v7 = vld [vmem:[#allocation8 + $0x60] sm:$0xff] }
  0x69   :  { %692 = vmatpush3.bf16.msra.mxu0 %v691_v21  ;;  %v745_v6 = vpack.c.bf16 %v285_v5, %v284_v4  ;;  %v287_v8 = vld [vmem:[#allocation8 + $0x68] sm:$0xff]  ;;  %v1083_v13 = vld [vmem:[%s1118_s5] sm:$0xf]  ;;  %v288_v19 = vld [vmem:[#allocation8 + $0x70] sm:$0xff]  ;;  %s938_s5 = smov [#allocation11]  }
  0x6a   :  { %693 = vmatprep.subr.bf16.mxu0 %v935_v0  ;;  %v748_v9 = vpack.c.bf16 %v287_v8, %v286_v7  ;;  %v111_v14 = vrot.slane %v1083_v13, %v110_v12  ;;  %v289_v20 = vld [vmem:[#allocation8 + $0x78] sm:$0xff]  ;;  %v365_v22 = vld [vmem:[#allocation10] sm:$0xff]  ;;  %v366_v23 = vld [vmem:[#allocation10 + $0x8] sm:$0xff]  ;;  %v293_v52 = vrot.slane %v1083_v13, %v292_v51  ;;  %s462_s8 = sshll.u32 %s938_s5, 4  ;;  %s463_s8 = int_to_ptr.vmem [resolvable:$true] %s462_s8 }
  0x6b   :  { %716 = vmatpush3.bf16.msra.mxu1 %v715_v30  ;;  %v751_v21 = vpack.c.bf16 %v289_v20, %v288_v19  ;;  %v367_v24 = vld [vmem:[#allocation10 + $0x10] sm:$0xff]  ;;  %v754_v25 = vpack.c.bf16 %v366_v23, %v365_v22  ;;  %v368_v26 = vld [vmem:[#allocation10 + $0x18] sm:$0xff]  ;;  %v369_v28 = vld [vmem:[#allocation10 + $0x20] sm:$0xff]  ;;  %s898_s3 = scalar_lea.vmem %s463_s8, 128  ;;  %p903_p13 = scmp.lt.s32.totalorder %s463_s8, %s463_s8 }
  0x6c   :  { %717 = vmatprep.subr.bf16.mxu1 %v935_v0  ;;  %v370_v29 = vld [vmem:[#allocation10 + $0x28] sm:$0xff]  ;;  %v372_v31 = vld [vmem:[#allocation10 + $0x38] sm:$0xff]  ;;  %v379_v48 = vld [vmem:[#allocation10 + $0x70] sm:$0xff]  ;;  %p899_p12 = scmp.ne.s32.totalorder %s463_s8, %s898_s3  ;;  %p904_p0 = scmp.lt.s32.totalorder %s898_s3, %s898_s3 }
  0x6d   :  { %695 = vmatpush3.bf16.msra.mxu0 %v694_v27  ;;  %v757_v27 = vpack.c.bf16 %v368_v26, %v367_v24  ;;  %v760_v30 = vpack.c.bf16 %v370_v29, %v369_v28  ;;  %v374_v34 = vld [vmem:[#allocation10 + $0x48] sm:$0xff]  ;;  %v376_v37 = vld [vmem:[#allocation10 + $0x58] sm:$0xff] }
  0x6e   :  { %696 = vmatprep.subr.bf16.mxu0 %v935_v0  ;;  %v378_v40 = vld [vmem:[#allocation10 + $0x68] sm:$0xff]  ;;  %v380_v49 = vld [vmem:[#allocation10 + $0x78] sm:$0xff]  ;;  %p905_p1 = por %p904_p0, %p903_p13 }
  0x6f   :  { %719 = vmatpush3.bf16.msra.mxu1 %v718_v36  ;;  %v375_v36 = vld [vmem:[#allocation10 + $0x50] sm:$0xff] }
  0x70   :  { %720 = vmatprep.subr.bf16.mxu1 %v935_v0  ;;  %v769_v38 = vpack.c.bf16 %v376_v37, %v375_v36  ;;  %p906_p2 = pnand %p905_p1, %p899_p12 }
  0x71   :  { %698 = vmatpush3.bf16.msra.mxu0 %v697_v33  ;;  %v373_v33 = vld [vmem:[#allocation10 + $0x40] sm:$0xff] }
  0x72   :  { %699 = vmatprep.subr.bf16.mxu0 %v935_v0  ;;  %v766_v35 = vpack.c.bf16 %v374_v34, %v373_v33 }
  0x73   :  { %722 = vmatpush3.bf16.msra.mxu1 %v721_v42  ;;  %v201_v42 = vsub.s32 1, %v1077_v11 }
  0x74   :  { %723 = vmatprep.subr.bf16.mxu1 %v935_v0 }
  0x75   :  { %701 = vmatpush3.bf16.msra.mxu0 %v700_v39  ;;  %v377_v39 = vld [vmem:[#allocation10 + $0x60] sm:$0xff]  ;;  %v202_v43 = vrot.slane %v1083_v13, %v201_v42 }
  0x76   :  { %702 = vmatprep.subr.bf16.mxu0 %v935_v0  ;;  %v772_v41 = vpack.c.bf16 %v378_v40, %v377_v39 }
  0x77   :  { %725 = vmatpush3.bf16.msra.mxu1 %v724_v46 }
  0x78   :  { %726 = vmatprep.subr.bf16.mxu1 %v935_v0 }
  0x79   :  { %704 = vmatpush3.bf16.msra.mxu0 %v703_v45 }
  0x7a   :  { %729 = vmatprep.subr.bf16.mxu0 %v935_v0 }
  0x7b   :  { %728 = vmatpush3.bf16.msra.mxu1 %v727_v50  ;;  %v775_v50 = vpack.c.bf16 %v380_v49, %v379_v48 }
  0x7c   :  { %574 = vmatmul.mubr.f32.vlgmr.msra.gmra.mrb[0].mxu0 %v91_v47  ;;  %753 = vmatprep.subr.bf16.mxu1 %v935_v0 }
  0x7d   :  { %643 = vmatprep.mubr.msk.f32.mxu0 %vm936_vm0, %v937_v1  ;;  %731 = vmatpush3.bf16.msra.mxu0 %v730_v54 }
  0x7e   :  { %732 = vmatprep.subr.bf16.mxu0 %v935_v0 }
  0x81   :  { %734 = vmatpush3.bf16.msra.mxu0 %v733_v56  ;;  %v383_v56 = vsub.s32 3, %v1077_v11 }
  0x82   :  { %735 = vmatprep.subr.bf16.mxu0 %v935_v0 }
  0x83   :  { %v384_v57 = vrot.slane %v1083_v13, %v383_v56 }
  0x85   :  { %737 = vmatpush3.bf16.msra.mxu0 %v736_v59 }
  0x86   :  { %738 = vmatprep.subr.bf16.mxu0 %v935_v0 }
  0x89   :  { %740 = vmatpush3.bf16.msra.mxu0 %v739_v62 }
  0x8a   :  { %741 = vmatprep.subr.bf16.mxu0 %v935_v0 }
  0x8d   :  { %743 = vmatpush3.bf16.msra.mxu0 %v742_v3 }
  0x8e   :  { %744 = vmatprep.subr.bf16.mxu0 %v935_v0 }
  0x91   :  { %746 = vmatpush3.bf16.msra.mxu0 %v745_v6 }
  0x92   :  { %747 = vmatprep.subr.bf16.mxu0 %v935_v0 }
  0x95   :  { %749 = vmatpush3.bf16.msra.mxu0 %v748_v9 }
  0x96   :  { %750 = vmatprep.subr.bf16.mxu0 %v935_v0 }
  0x99   :  { %752 = vmatpush3.bf16.msra.mxu0 %v751_v21 }
 0x14f   :  { %v178_v15 = vpop.f32.mrb[0].mxu0 }
 0x150   :  { %v179_v16 = vadd.f32 %v178_v15, %v111_v14  ;;  %v575_v17 = vpop.f32.mrb[1].mxu0 }
 0x152   :  { %v182_v18 = vmax.f32 %v179_v16, 0.0 }
 0x154   :  { %609 = vmatmul.mubr.f32.vlgmr.msra.gmra.mrb[0].mxu1 %v182_v18 }
 0x155   :  { %678 = vmatprep.mubr.msk.f32.mxu1 %vm936_vm0, %v937_v1  ;;  %755 = vmatpush3.bf16.msra.mxu1 %v754_v25  ;;  %v371_v1 = vld [vmem:[#allocation10 + $0x30] sm:$0xff] }
 0x156   :  { %756 = vmatprep.subr.bf16.mxu1 %v935_v0  ;;  %v763_v32 = vpack.c.bf16 %v372_v31, %v371_v1 }
 0x159   :  { %758 = vmatpush3.bf16.msra.mxu1 %v757_v27 }
 0x15a   :  { %759 = vmatprep.subr.bf16.mxu1 %v935_v0 }
 0x15d   :  { %761 = vmatpush3.bf16.msra.mxu1 %v760_v30 }
 0x15e   :  { %762 = vmatprep.subr.bf16.mxu1 %v935_v0 }
 0x161   :  { %764 = vmatpush3.bf16.msra.mxu1 %v763_v32 }
 0x162   :  { %765 = vmatprep.subr.bf16.mxu1 %v935_v0 }
 0x165   :  { %767 = vmatpush3.bf16.msra.mxu1 %v766_v35 }
 0x166   :  { %768 = vmatprep.subr.bf16.mxu1 %v935_v0 }
 0x169   :  { %770 = vmatpush3.bf16.msra.mxu1 %v769_v38 }
 0x16a   :  { %771 = vmatprep.subr.bf16.mxu1 %v935_v0 }
 0x16d   :  { %773 = vmatpush3.bf16.msra.mxu1 %v772_v41 }
 0x16e   :  { %774 = vmatprep.subr.bf16.mxu1 %v935_v0 }
 0x171   :  { %776 = vmatpush3.bf16.msra.mxu1 %v775_v50 }
 0x227   :  { %v269_v44 = vpop.f32.mrb[0].mxu1 }
 0x228   :  { %v270_v45 = vadd.f32 %v269_v44, %v202_v43  ;;  %v610_v46 = vpop.f32.mrb[1].mxu1 }
 0x22a   :  { %v273_v47 = vmax.f32 %v270_v45, 0.0 }
 0x22c   :  { %644 = vmatmul.mubr.f32.vlgmr.msra.gmra.mrb[2].mxu0 %v273_v47 }
 0x2ff   :  { %v360_v53 = vpop.f32.mrb[2].mxu0 }
 0x300   :  { %v361_v54 = vadd.f32 %v360_v53, %v293_v52  ;;  %v645_v0 = vpop.f32.mrb[3].mxu0 }
 0x302   :  { %v364_v55 = vmax.f32 %v361_v54, 0.0 }
 0x304   :  { %679 = vmatmul.mubr.f32.vlgmr.msra.gmra.mrb[2].mxu1 %v364_v55 }
 0x3d7   :  { %v451_v58 = vpop.f32.mrb[2].mxu1 }
 0x3d8   :  { %v452_v59 = vadd.f32 %v451_v58, %v384_v57  ;;  %v680_v60 = vpop.f32.mrb[3].mxu1 }
 0x3da   :  { %455 = vst [vmem:[#allocation11] sm:$0xff] %v452_v59 }
 0x3db   :  { %909 = shalt.err (!%p906_p2)
}
 0x3dc   :  { %s910_s12 = scalar_lea.hbm %s1119_s6, 128 }
 0x3dd   :  { %p911_p3 = scmp.ne.s32.totalorder %s1119_s6, %s910_s12  ;;  %p914_p4 = scmp.lt.u32.totalorder %s910_s12, %s1119_s6 }
 0x3df   :  { %p916_p5 = pnand %p914_p4, %p911_p3 }
 0x3e1   :  { %919 = shalt.err (!%p916_p5)
}
 0x3e2   :  { %465 = dma.vmem_to_hbm [thread:$0]  %s463_s8, 128, %s1119_s6, [#allocation4]  }
 0x3e3   :  { %926 = dma.done.wait [#allocation4], 128  }
 0x3e4   :  { %927 = vsyncadd [#allocation4], 4294967168 }
 0x3e5   :  { %469 = vsyncpa [#allocation3], 1 }
 0x3e6   :  { %470 = vsyncpa [#allocation6], 1 }
 0x3e7   :  { %471 = vsyncpa [#allocation9], 1 }
 0x3e8   :  { %472 = vsyncpa [#allocation4], 1 }

</bundles_post_ra>
